<compile_context>
chip_gen: v7x
topology: tpu7x:2x2x1
jax: 0.10.0
libtpu: 0.0.40
codegen_flags: <defaults>
</compile_context>

<pallas_src>
import functools
import math

import jax
import jax.numpy as jnp
from jax import lax
from jax.experimental import pallas as pl
from jax.experimental.pallas import tpu as pltpu


# --------------------------- Tiled linear: x @ W + b --------------------------- #

def _linear_kernel(x_ref, w_ref, b_ref, o_ref, acc_ref):
    # x_ref: (tm, tk)  w_ref: (tk, tn)  b_ref: (1, tn)  o_ref: (tm, tn)
    @pl.when(pl.program_id(2) == 0)
    def _():
        acc_ref[...] = jnp.zeros_like(acc_ref)

    acc_ref[...] += jnp.dot(x_ref[...], w_ref[...],
                            preferred_element_type=jnp.float32)

    @pl.when(pl.program_id(2) == pl.num_programs(2) - 1)
    def _():
        o_ref[...] = (acc_ref[...] + b_ref[...].astype(jnp.float32)).astype(o_ref.dtype)


def pallas_linear(x, w, b, *, tm=256, tn=256, tk=512):
    """x: (B, T, C), w: (C, N) [in,out layout], b: (N,) -> (B, T, N)."""
    B, T, C = x.shape
    N = w.shape[1]
    M = B * T
    tm, tn, tk = min(tm, M), min(tn, N), min(tk, C)
    assert M % tm == 0 and N % tn == 0 and C % tk == 0

    out = pl.pallas_call(
        _linear_kernel,
        out_shape=jax.ShapeDtypeStruct((M, N), x.dtype),
        grid_spec=pltpu.PrefetchScalarGridSpec(
            num_scalar_prefetch=0,
            grid=(M // tm, N // tn, C // tk),
            in_specs=[
                pl.BlockSpec((tm, tk), lambda i, j, k: (i, k)),
                pl.BlockSpec((tk, tn), lambda i, j, k: (k, j)),
                pl.BlockSpec((1, tn), lambda i, j, k: (0, j)),
            ],
            out_specs=pl.BlockSpec((tm, tn), lambda i, j, k: (i, j)),
            scratch_shapes=[pltpu.VMEM((tm, tn), jnp.float32)],
        ),
        compiler_params=pltpu.CompilerParams(
            dimension_semantics=("parallel", "parallel", "arbitrary")),
    )(x.reshape(M, C), w, b.reshape(1, N))
    return out.reshape(B, T, N)


# --------------------------- Flash attention (GQA + bias) ---------------------- #

def _flash_attention_kernel(q_ref, k_ref, v_ref, bias_ref, o_ref,
                            qh_ref, m_ref, l_ref, acc_ref, *, scale):
    # q_ref:      (1, Tq, G, P*hs)   group-major query heads
    # k_ref/v_ref:(1, Tk, G, hs)
    # bias_ref:   (1, H, Tq, Tk)     H = G*P, broadcast over batch
    # o_ref:      (1, Tq, C)         C = H*hs, written directly in (B,T,C) layout
    # scratch: qh_ref (G,P,Tq,hs), m_ref/l_ref (G,P,Tq) f32, acc_ref (G,P,Tq,hs) f32
    G, P, Tq, hs = acc_ref.shape
    Tk = k_ref.shape[1]
    ki = pl.program_id(2)

    @pl.when(ki == 0)
    def _init():
        m_ref[...] = jnp.full_like(m_ref, -jnp.inf)
        l_ref[...] = jnp.zeros_like(l_ref)
        acc_ref[...] = jnp.zeros_like(acc_ref)
        # Re-pack the q tile head-major once per q tile: (Tq, G, P*hs) -> (G, P, Tq, hs)
        for g in range(G):
            for j in range(P):
                qh_ref[g, j] = q_ref[0, :, g, j * hs:(j + 1) * hs]

    for g in range(G):
        q_g = qh_ref[g]                                              # (P, Tq, hs)
        k_g = jnp.broadcast_to(k_ref[0, :, g, :][None], (P, Tk, hs))  # shared KV group
        v_g = jnp.broadcast_to(v_ref[0, :, g, :][None], (P, Tk, hs))
        bias_g = bias_ref[0, g * P:(g + 1) * P]                      # (P, Tq, Tk)

        # s[p, q, k] = sum_d q[p, q, d] * k[p, k, d]   (per-head MXU matmuls)
        s = lax.dot_general(q_g, k_g, (((2,), (2,)), ((0,), (0,))),
                            preferred_element_type=jnp.float32)      # (P, Tq, Tk)
        s = s * scale + bias_g.astype(jnp.float32)

        m_prev = m_ref[g]                                            # (P, Tq)
        l_prev = l_ref[g]
        m_next = jnp.maximum(m_prev, jnp.max(s, axis=-1))
        alpha = jnp.exp(m_prev - m_next)
        p_mat = jnp.exp(s - m_next[..., None])                       # (P, Tq, Tk)
        l_ref[g] = alpha * l_prev + jnp.sum(p_mat, axis=-1)
        m_ref[g] = m_next

        # pv[p, q, d] = sum_k p[p, q, k] * v[p, k, d]
        pv = lax.dot_general(p_mat.astype(v_g.dtype), v_g,
                             (((2,), (1,)), ((0,), (0,))),
                             preferred_element_type=jnp.float32)     # (P, Tq, hs)
        acc_ref[g] = alpha[..., None] * acc_ref[g] + pv

    @pl.when(ki == pl.num_programs(2) - 1)
    def _finalize():
        inv_l = pl.reciprocal(l_ref[...], approx=True)               # (G, P, Tq)
        out = acc_ref[...] * inv_l[..., None]                        # (G, P, Tq, hs)
        for g in range(G):
            for j in range(P):
                h = g * P + j
                o_ref[0, :, h * hs:(h + 1) * hs] = out[g, j].astype(o_ref.dtype)


def pallas_flash_attention(q, k, v, attention_bias, *, scale,
                           block_q=128, block_k=128):
    """q: (B,T,G,P*hs), k/v: (B,T,G,hs), bias: (1,H,T,T) -> (B,T,H*hs)."""
    B, T, G, hs = k.shape
    P = q.shape[-1] // hs
    H = G * P
    Tq, Tk = min(block_q, T), min(block_k, T)
    assert T % Tq == 0 and T % Tk == 0

    kernel = functools.partial(_flash_attention_kernel, scale=scale)
    return pl.pallas_call(
        kernel,
        out_shape=jax.ShapeDtypeStruct((B, T, H * hs), q.dtype),
        grid_spec=pltpu.PrefetchScalarGridSpec(
            num_scalar_prefetch=0,
            grid=(B, T // Tq, T // Tk),
            in_specs=[
                pl.BlockSpec((1, Tq, G, P * hs), lambda b, qi, ki: (b, qi, 0, 0)),
                pl.BlockSpec((1, Tk, G, hs), lambda b, qi, ki: (b, ki, 0, 0)),
                pl.BlockSpec((1, Tk, G, hs), lambda b, qi, ki: (b, ki, 0, 0)),
                pl.BlockSpec((1, H, Tq, Tk), lambda b, qi, ki: (0, 0, qi, ki)),
            ],
            out_specs=pl.BlockSpec((1, Tq, H * hs), lambda b, qi, ki: (b, qi, 0)),
            scratch_shapes=[
                pltpu.VMEM((G, P, Tq, hs), q.dtype),       # head-major q tile
                pltpu.VMEM((G, P, Tq), jnp.float32),       # running max
                pltpu.VMEM((G, P, Tq), jnp.float32),       # running sum
                pltpu.VMEM((G, P, Tq, hs), jnp.float32),   # output accumulator
            ],
        ),
        compiler_params=pltpu.CompilerParams(
            dimension_semantics=("parallel", "parallel", "arbitrary"),
            vmem_limit_bytes=64 * 1024 * 1024,
        ),
    )(q, k, v, attention_bias)


# ------------------------------ Module forward --------------------------------- #

def causal_self_attention_forward(x, params, attention_bias, *,
                                  n_head, n_query_groups, head_size,
                                  block_q=128, block_k=128):
    """Mirrors CausalSelfAttention.forward with kv_cache=None, attn_pdrop=0."""
    B, T, C = x.shape
    G = n_query_groups
    P = n_head // n_query_groups
    total_qkv = P + 2
    scale = 1.0 / math.sqrt(head_size)

    # qkv = self.attn(x)
    qkv = pallas_linear(x, params["w_attn"], params["b_attn"])       # (B,T,(H+2G)*hs)

    # grouped-query split (group-major head order); reshapes are free (row-major),
    # no (B,H,T,hs) transposes anywhere.
    qkv = qkv.reshape(B, T, G, total_qkv, head_size)
    q = qkv[:, :, :, :P, :].reshape(B, T, G, P * head_size)          # (B,T,G,P*hs)
    k = qkv[:, :, :, P, :]                                           # (B,T,G,hs)
    v = qkv[:, :, :, P + 1, :]                                       # (B,T,G,hs)

    # flash attention writes the (B,T,C) layout directly
    y = pallas_flash_attention(q, k, v, attention_bias, scale=scale,
                               block_q=block_q, block_k=block_k)     # (B,T,H*hs)

    # self.proj(y)
    return pallas_linear(y, params["w_proj"], params["b_proj"])


# ------------------------------ Pure-JAX reference ------------------------------ #

def reference_forward(x, params, attention_bias, *, n_head, n_query_groups, head_size):
    B, T, C = x.shape
    q_per_kv = n_head // n_query_groups
    total_qkv = q_per_kv + 2
    scale = 1.0 / math.sqrt(head_size)

    qkv = x @ params["w_attn"] + params["b_attn"]
    qkv = qkv.reshape(B, T, n_query_groups, total_qkv, head_size)
    q = qkv[:, :, :, :q_per_kv, :].reshape(B, T, n_head, head_size)
    k = qkv[:, :, :, q_per_kv:q_per_kv + 1, :].reshape(B, T, n_query_groups, head_size)
    v = qkv[:, :, :, q_per_kv + 1:, :].reshape(B, T, n_query_groups, head_size)

    q = q.transpose(0, 2, 1, 3)
    k = jnp.repeat(k.transpose(0, 2, 1, 3), q_per_kv, axis=1)
    v = jnp.repeat(v.transpose(0, 2, 1, 3), q_per_kv, axis=1)

    s = jnp.einsum("bhqd,bhkd->bhqk", q, k) * scale + attention_bias
    p = jax.nn.softmax(s, axis=-1)
    y = jnp.einsum("bhqk,bhkd->bhqd", p, v)
    y = y.transpose(0, 2, 1, 3).reshape(B, T, C)
    return y @ params["w_proj"] + params["b_proj"]


# ----------------------------------- Main --------------------------------------- #

if __name__ == "__main__":
    # Small config: n_embd=64, n_head=4, n_query_groups=2, head_size=16, bias=True
    n_embd, n_head, n_query_groups, head_size = 64, 4, 2, 16
    B, T = 2, 8
    attn_out = (n_head + 2 * n_query_groups) * head_size   # 128

    key = jax.random.PRNGKey(0)
    k_x, k_wa, k_ba, k_wp, k_bp, k_bias = jax.random.split(key, 6)

    x = jax.random.normal(k_x, (B, T, n_embd), dtype=jnp.float32)

    params = {
        # weights stored as (in, out) so the kernel computes x @ W + b
        "w_attn": 0.02 * jax.random.normal(k_wa, (n_embd, attn_out), dtype=jnp.float32),
        "b_attn": 0.02 * jax.random.normal(k_ba, (attn_out,), dtype=jnp.float32),
        "w_proj": 0.02 * jax.random.normal(k_wp, (n_embd, n_embd), dtype=jnp.float32),
        "b_proj": 0.02 * jax.random.normal(k_bp, (n_embd,), dtype=jnp.float32),
    }

    # additive relative-position attention bias, broadcast over batch: (1, n_head, T, T)
    attention_bias = 0.1 * jax.random.normal(k_bias, (1, n_head, T, T), dtype=jnp.float32)

    out = causal_self_attention_forward(
        x, params, attention_bias,
        n_head=n_head, n_query_groups=n_query_groups, head_size=head_size)
    out = jax.block_until_ready(out)

    ref = reference_forward(
        x, params, attention_bias,
        n_head=n_head, n_query_groups=n_query_groups, head_size=head_size)

    assert out.shape == (B, T, n_embd)
    # tolerance slightly loosened for pl.reciprocal(approx=True) in the softmax
    assert jnp.allclose(out, ref, atol=2e-3, rtol=2e-3), "mismatch vs reference"
    print("KERNEL_OK")
</pallas_src>

<mosaic_0001>
module attributes {stable_mosaic.version = 11 : i64} {
  func.func @_linear_kernel(%arg0: i32, %arg1: i32, %arg2: i32, %arg3: memref<16x64xf32, #tpu.memory_space<vmem>>, %arg4: memref<64x128xf32, #tpu.memory_space<vmem>>, %arg5: memref<1x128xf32, #tpu.memory_space<vmem>>, %arg6: memref<16x128xf32, #tpu.memory_space<vmem>>, %arg7: memref<16x128xf32, #tpu.memory_space<vmem>>) attributes {dimension_semantics = [#tpu.dimension_semantics<parallel>, #tpu.dimension_semantics<parallel>, #tpu.dimension_semantics<arbitrary>], iteration_bounds = array<i64: 1, 1, 1>, scalar_prefetch = 0 : i64, scratch_operands = 1 : i64, tpu.core_type = #tpu.core_type<tc>, window_params = [{transform_indices = @transform_0, window_bounds = array<i64: 16, 64>}, {transform_indices = @transform_1, window_bounds = array<i64: 64, 128>}, {transform_indices = @transform_2, window_bounds = array<i64: 1, 128>}, {transform_indices = @transform_3, window_bounds = array<i64: 16, 128>}]} {
    %c0_i32 = arith.constant 0 : i32
    %0 = arith.cmpi eq, %arg2, %c0_i32 : i32
    %1 = arith.extui %0 : i1 to i32
    %c0_i32_0 = arith.constant 0 : i32
    %2 = arith.cmpi ne, %1, %c0_i32_0 : i32
    scf.if %2 {
      %cst_10 = arith.constant 0.000000e+00 : f32
      %12 = vector.broadcast %cst_10 : f32 to vector<16x128xf32>
      %c0_11 = arith.constant 0 : index
      %c0_12 = arith.constant 0 : index
      %13 = vector.load %arg7[%c0_11, %c0_12] : memref<16x128xf32, #tpu.memory_space<vmem>>, vector<16x128xf32>
      tpu.vector_store %arg7[%c0_11, %c0_12], %12 {strides = array<i32>} : memref<16x128xf32, #tpu.memory_space<vmem>>, vector<16x128xf32>,
    } else {
    }
    %c0 = arith.constant 0 : index
    %c0_1 = arith.constant 0 : index
    %3 = vector.load %arg7[%c0, %c0_1] : memref<16x128xf32, #tpu.memory_space<vmem>>, vector<16x128xf32>
    %c0_2 = arith.constant 0 : index
    %c0_3 = arith.constant 0 : index
    %4 = vector.load %arg3[%c0_2, %c0_3] : memref<16x64xf32, #tpu.memory_space<vmem>>, vector<16x64xf32>
    %c0_4 = arith.constant 0 : index
    %c0_5 = arith.constant 0 : index
    %5 = vector.load %arg4[%c0_4, %c0_5] : memref<64x128xf32, #tpu.memory_space<vmem>>, vector<64x128xf32>
    %cst = arith.constant dense<0.000000e+00> : vector<16x128xf32>
    %6 = tpu.matmul %4, %5, %cst {dimension_numbers = #tpu.dot_dimension_numbers<[1], [0], [0], [1], [0, 0, 1, 1], [], []>} : vector<16x64xf32>, vector<64x128xf32>, vector<16x128xf32> -> vector<16x128xf32>
    %7 = arith.addf %3, %6 : vector<16x128xf32>
    %c0_6 = arith.constant 0 : index
    %c0_7 = arith.constant 0 : index
    %8 = vector.load %arg7[%c0_6, %c0_7] : memref<16x128xf32, #tpu.memory_space<vmem>>, vector<16x128xf32>
    tpu.vector_store %arg7[%c0_6, %c0_7], %7 {strides = array<i32>} : memref<16x128xf32, #tpu.memory_space<vmem>>, vector<16x128xf32>,
    %c0_i32_8 = arith.constant 0 : i32
    %9 = arith.cmpi eq, %arg2, %c0_i32_8 : i32
    %10 = arith.extui %9 : i1 to i32
    %c0_i32_9 = arith.constant 0 : i32
    %11 = arith.cmpi ne, %10, %c0_i32_9 : i32
    scf.if %11 {
      %c0_10 = arith.constant 0 : index
      %c0_11 = arith.constant 0 : index
      %12 = vector.load %arg7[%c0_10, %c0_11] : memref<16x128xf32, #tpu.memory_space<vmem>>, vector<16x128xf32>
      %c0_12 = arith.constant 0 : index
      %c0_13 = arith.constant 0 : index
      %13 = vector.load %arg5[%c0_12, %c0_13] : memref<1x128xf32, #tpu.memory_space<vmem>>, vector<1x128xf32>
      %14 = vector.broadcast %13 : vector<1x128xf32> to vector<16x128xf32>
      %15 = arith.addf %12, %14 : vector<16x128xf32>
      %c0_14 = arith.constant 0 : index
      %c0_15 = arith.constant 0 : index
      %16 = vector.load %arg6[%c0_14, %c0_15] : memref<16x128xf32, #tpu.memory_space<vmem>>, vector<16x128xf32>
      tpu.vector_store %arg6[%c0_14, %c0_15], %15 {strides = array<i32>} : memref<16x128xf32, #tpu.memory_space<vmem>>, vector<16x128xf32>,
    } else {
    }
    return
  }
  func.func @transform_0(%arg0: i32, %arg1: i32, %arg2: i32) -> (i32, i32) {
    %c0_i32 = arith.constant 0 : i32
    return %arg0, %arg2 : i32, i32
  }
  func.func @transform_1(%arg0: i32, %arg1: i32, %arg2: i32) -> (i32, i32) {
    %c0_i32 = arith.constant 0 : i32
    return %arg2, %arg1 : i32, i32
  }
  func.func @transform_2(%arg0: i32, %arg1: i32, %arg2: i32) -> (i32, i32) {
    %c0_i32 = arith.constant 0 : i32
    %c0_i32_0 = arith.constant 0 : i32
    return %c0_i32, %arg1 : i32, i32
  }
  func.func @transform_3(%arg0: i32, %arg1: i32, %arg2: i32) -> (i32, i32) {
    %c0_i32 = arith.constant 0 : i32
    return %arg0, %arg1 : i32, i32
  }
}

</mosaic_0001>

<bundles_post_ra>
// kernel: tpu_custom_call.1
= control target key start
LH: loop header
LB: loop body
LE: loop exit
PB: predicated region body
PF: predicated region fallthrough
CT: control target
= control target key end

     0   :  { %8 = vsyncpa [#allocation4], 0  ;;  %s381_s0 = inlined_call_operand.hbm [shape: f32[16,64], index: 0, kind: input, shape index: {}]   ;;  %s382_s1 = inlined_call_operand.hbm [shape: f32[64,128], index: 1, kind: input, shape index: {}]   ;;  %s383_s2 = inlined_call_operand.vmem [shape: f32[1,128], index: 2, kind: input, shape index: {}]   ;;  %s384_s3 = inlined_call_operand.hbm [shape: f32[16,128], index: 3, kind: output, shape index: {}]  }
   0x1   :  { %9 = vsyncpa [#allocation7], 0 }
   0x2   :  { %10 = vsyncpa [#allocation5], 0  ;;  %s306_s12 = smov [#allocation3]   ;;  %s234_s16 = scalar_lea.hbm %s381_s0, 256 }
   0x3   :  { %s16_s13 = sshll.u32 %s306_s12, 4  ;;  %p235_p0 = scmp.ne.s32.totalorder %s381_s0, %s234_s16  ;;  %s17_s13 = int_to_ptr.vmem [resolvable:$true] %s16_s13 }
   0x4   :  { %p238_p1 = scmp.lt.u32.totalorder %s234_s16, %s381_s0 }
   0x6   :  { %p240_p2 = pnand %p238_p1, %p235_p0 }
   0x8   :  { %243 = shalt.err (!%p240_p2)
}
   0x9   :  { %s244_s21 = scalar_lea.vmem %s17_s13, 256  ;;  %p249_p4 = scmp.lt.s32.totalorder %s17_s13, %s17_s13 }
   0xa   :  { %p245_p3 = scmp.ne.s32.totalorder %s17_s13, %s244_s21  ;;  %p250_p5 = scmp.lt.s32.totalorder %s244_s21, %s244_s21 }
   0xc   :  { %p251_p6 = por %p250_p5, %p249_p4 }
   0xe   :  { %p252_p7 = pnand %p251_p6, %p245_p3 }
  0x10   :  { %255 = shalt.err (!%p252_p7)
}
  0x11   :  { %s307_s22 = smov 128   ;;  %s308_s23 = smov 8  }
  0x12   :  { %22 = dma.hbm_to_vmem [thread:$0]  %s381_s0, 256, %s17_s13, [#allocation4], %s307_s22, %s307_s22, %s308_s23  }
  0x13   :  { %s309_s26 = smov [#allocation6]   ;;  %s256_s30 = scalar_lea.hbm %s382_s1, 1024 }
  0x14   :  { %s28_s27 = sshll.u32 %s309_s26, 4  ;;  %p257_p8 = scmp.ne.s32.totalorder %s382_s1, %s256_s30  ;;  %s29_s27 = int_to_ptr.vmem [resolvable:$true] %s28_s27 }
  0x15   :  { %p260_p9 = scmp.lt.u32.totalorder %s256_s30, %s382_s1 }
  0x17   :  { %p262_p10 = pnand %p260_p9, %p257_p8 }
  0x19   :  { %265 = shalt.err (!%p262_p10)
}
  0x1a   :  { %s266_s8 = scalar_lea.vmem %s29_s27, 1024  ;;  %p271_p12 = scmp.lt.s32.totalorder %s29_s27, %s29_s27 }
  0x1b   :  { %p267_p11 = scmp.ne.s32.totalorder %s29_s27, %s266_s8  ;;  %p272_p13 = scmp.lt.s32.totalorder %s266_s8, %s266_s8 }
  0x1d   :  { %p273_p0 = por %p272_p13, %p271_p12 }
  0x1f   :  { %p274_p1 = pnand %p273_p0, %p267_p11 }
  0x21   :  { %277 = shalt.err (!%p274_p1)
}
  0x22   :  { %34 = dma.hbm_to_vmem [thread:$0]  %s382_s1, 1024, %s29_s27, [#allocation7], %s307_s22, %s307_s22, %s308_s23  }
  0x23   :  { %300 = dma.done.wait [#allocation4], 256  }
  0x24   :  { %301 = vsyncadd [#allocation4], 4294967040 }
  0x25   :  { %302 = dma.done.wait [#allocation7], 1024  }
  0x26   :  { %303 = vsyncadd [#allocation7], 4294966272  ;;  %v53_v0 = vld [vmem:[#allocation6] sm:$0xff]  ;;  %v54_v1 = vld [vmem:[#allocation6 + $0x8] sm:$0xff]  ;;  %vm61_vm0 = vcmask 523264   ;;  %s310_s11 = smov [#allocation8]  }
  0x27   :  { %v55_v2 = vld [vmem:[#allocation6 + $0x10] sm:$0xff]  ;;  %v213_v3 = vpack.c.bf16 %v54_v1, %v53_v0  ;;  %v56_v4 = vld [vmem:[#allocation6 + $0x18] sm:$0xff]  ;;  %v57_v6 = vld [vmem:[#allocation6 + $0x20] sm:$0xff]  ;;  %s168_s12 = sshll.u32 %s310_s11, 4  ;;  %s169_s12 = int_to_ptr.vmem [resolvable:$true] %s168_s12 }
  0x28   :  { %v217_v5 = vpack.c.bf16 %v56_v4, %v55_v2  ;;  %v58_v7 = vld [vmem:[#allocation6 + $0x28] sm:$0xff]  ;;  %v51_v8 = vld [vmem:[#allocation3] sm:$0xff]  ;;  %v60_v11 = vld [vmem:[#allocation6 + $0x38] sm:$0xff]  ;;  %s278_s13 = scalar_lea.vmem %s169_s12, 256  ;;  %p283_p3 = scmp.lt.s32.totalorder %s169_s12, %s169_s12 }
  0x29   :  { %214 = vmatprep.subr.bf16.mxu0 %v213_v3  ;;  %210 = vmatprep.mubr.msk.f32.mxu0 %vm61_vm0, %v51_v8  ;;  %v221_v9 = vpack.c.bf16 %v58_v7, %v57_v6  ;;  %v59_v10 = vld [vmem:[#allocation6 + $0x30] sm:$0xff]  ;;  %v52_v13 = vld [vmem:[#allocation3 + $0x8] sm:$0xff]  ;;  %p279_p2 = scmp.ne.s32.totalorder %s169_s12, %s278_s13  ;;  %p284_p4 = scmp.lt.s32.totalorder %s278_s13, %s278_s13 }
  0x2a   :  { %216 = vmatpush3.bf16.msra.mxu0 %v213_v3  ;;  %v225_v12 = vpack.c.bf16 %v60_v11, %v59_v10  ;;  %v183_v14 = vld [vmem:[%s383_s2] ss:$0 sm:$0xff] }
  0x2b   :  { %218 = vmatprep.subr.bf16.mxu0 %v217_v5  ;;  %p285_p5 = por %p284_p4, %p283_p3 }
  0x2d   :  { %p286_p6 = pnand %p285_p5, %p279_p2 }
  0x2e   :  { %220 = vmatpush3.bf16.msra.mxu0 %v217_v5 }
  0x2f   :  { %222 = vmatprep.subr.bf16.mxu0 %v221_v9 }
  0x32   :  { %224 = vmatpush3.bf16.msra.mxu0 %v221_v9 }
  0x33   :  { %226 = vmatprep.subr.bf16.mxu0 %v225_v12 }
  0x36   :  { %228 = vmatpush3.bf16.msra.mxu0 %v225_v12 }
  0x39   :  { %211 = vmatmul.mubr.msk.f32.vlgmr.msra.gmra.mrb[0].mxu0 %vm61_vm0, %v52_v13 }
 0x10c   :  { %v212_v15 = vpop.f32.mrb[0].mxu0 }
 0x10d   :  { %v160_v16 = vadd.f32 %v212_v15, %v183_v14  ;;  %v134_v17 = vpop.f32.mrb[1].mxu0 }
 0x10e   :  { %v159_v18 = vadd.f32 %v183_v14, %v134_v17 }
 0x10f   :  { %162 = vst [vmem:[#allocation8 + $0x8] sm:$0xff] %v160_v16 }
 0x110   :  { %161 = vst [vmem:[#allocation8] sm:$0xff] %v159_v18 }
 0x111   :  { %289 = shalt.err (!%p286_p6)
}
 0x112   :  { %s290_s2 = scalar_lea.hbm %s384_s3, 256 }
 0x113   :  { %p291_p7 = scmp.ne.s32.totalorder %s384_s3, %s290_s2  ;;  %p294_p8 = scmp.lt.u32.totalorder %s290_s2, %s384_s3 }
 0x115   :  { %p296_p9 = pnand %p294_p8, %p291_p7 }
 0x117   :  { %299 = shalt.err (!%p296_p9)
}
 0x118   :  { %174 = dma.vmem_to_hbm [thread:$0]  %s169_s12, 256, %s384_s3, [#allocation5], %s307_s22, %s307_s22, %s308_s23  }
 0x119   :  { %304 = dma.done.wait [#allocation5], 256  }
 0x11a   :  { %305 = vsyncadd [#allocation5], 4294967040 }
 0x11b   :  { %178 = vsyncpa [#allocation4], 1 }
 0x11c   :  { %179 = vsyncpa [#allocation7], 1 }
 0x11d   :  { %180 = vsyncpa [#allocation5], 1 }

</bundles_post_ra>
